<compile_context>
chip_gen: v6e
topology: v6e:2x2x1
jax: 0.10.0
libtpu: 0.0.40
codegen_flags: <defaults>
</compile_context>

<pallas_src>
import math

import jax
import jax.numpy as jnp
from jax.experimental import pallas as pl
from jax.experimental.pallas import tpu as pltpu


def _round_up(x, m):
    return (x + m - 1) // m * m


def _largest_divisor_tile(n, cap, step=128):
    """Largest multiple of `step` that divides `n` and is <= cap (n % step == 0)."""
    cap = max(step, min(cap, n))
    t = (cap // step) * step
    while t > step and n % t:
        t -= step
    return t


def _make_gcn_kernel(support_resident):
    def gcn_kernel(a_ref, s_ref, b_ref, o_ref):
        """One (row-tile, k-tile) step of out = A @ support + bias.

        The f32 output block is resident across k (block index (i, 0)), so it
        doubles as the accumulator."""
        k = pl.program_id(1)

        @pl.when(k == 0)
        def _():
            o_ref[...] = jnp.zeros_like(o_ref)

        if support_resident:
            # Whole padded support slab is resident in VMEM; slice the k-chunk.
            tk = a_ref.shape[1]
            off = pl.multiple_of(k * tk, 128)
            s_blk = s_ref[pl.ds(off, tk), :]
        else:
            s_blk = s_ref[...]

        o_ref[...] += jnp.dot(a_ref[...], s_blk,
                              preferred_element_type=jnp.float32)

        @pl.when(k == pl.num_programs(1) - 1)
        def _():
            # Bias applied exactly once per output tile (broadcast over rows).
            o_ref[...] += b_ref[...]

    return gcn_kernel


def graph_convolution(x, weight, bias, alpha_table, edge_index, edge_rel,
                      num_nodes, *, compute_dtype=jnp.bfloat16,
                      a_tile_budget_bytes=4 * 1024 * 1024,
                      support_resident=None):
    """Forward pass matching GraphConvolution.forward(input, adj) where
    adj = (edge_index[2, E], edge_rel[E], num_nodes)."""
    N, _ = x.shape
    f_out = weight.shape[1]
    itemsize = jnp.dtype(compute_dtype).itemsize

    # ---- padded sizes (lane-dense / (8,128)-aligned) -------------------------
    f_pad = _round_up(max(f_out, 128), 128)
    n_base = _round_up(max(num_nodes, 128), 128)
    # Pad n further for larger graphs so the divisor search below never
    # degrades to tiny tiles for awkward sizes (e.g. 13*128).
    if n_base > 1024:
        n_pad = _round_up(n_base, 512)
    elif n_base > 256:
        n_pad = _round_up(n_base, 256)
    else:
        n_pad = n_base

    # ---- tile selection ------------------------------------------------------
    # Row tile: as big as possible but capped at n_pad // 2 so the "parallel"
    # axis has >= 2 tiles (both v7x TensorCores busy).
    tm_cap = n_pad // 2 if n_pad >= 256 else n_pad
    tm = _largest_divisor_tile(n_pad, min(tm_cap, 1024))
    # Reduction tile: as big as possible within the per-buffer A VMEM budget.
    tk_cap = max(128, a_tile_budget_bytes // (tm * itemsize))
    tk = _largest_divisor_tile(n_pad, min(tk_cap, 4096))
    k_steps = n_pad // tk

    if support_resident is None:
        # Hold the whole padded support slab resident if it is small enough
        # (double-buffered worst case still leaves plenty of 48 MiB headroom).
        support_resident = n_pad * f_pad * itemsize <= 6 * 1024 * 1024

    # ---- glue (plain JAX): ONE padded symmetric scatter + cast ---------------
    # Scatter both edge directions in a single scatter-add directly into the
    # padded buffer: no A + A.T pass, no separate pad copy.  (Self-loops get
    # counted twice, matching the PyTorch A + A.transpose(0, 1).)
    alp = alpha_table[edge_rel, 0]                       # (E,), padding_idx=0 -> 0.0
    rows, cols = edge_index[0], edge_index[1]
    sym_rows = jnp.concatenate([rows, cols])
    sym_cols = jnp.concatenate([cols, rows])
    sym_vals = jnp.concatenate([alp, alp])
    A_p = (jnp.zeros((n_pad, n_pad), jnp.float32)
           .at[sym_rows, sym_cols].add(sym_vals)
           .astype(compute_dtype))

    # support = X @ W: tiny, badly MXU-shaped matmul, hoisted and done once.
    support = jnp.dot(x.astype(jnp.float32), weight.astype(jnp.float32))
    s_p = (jnp.zeros((n_pad, f_pad), compute_dtype)
           .at[:N, :f_out].set(support.astype(compute_dtype)))
    b_p = jnp.zeros((1, f_pad), jnp.float32).at[0, :f_out].set(
        bias.astype(jnp.float32))

    # ---- pallas_call ----------------------------------------------------------
    a_spec = pl.BlockSpec((tm, tk), lambda i, k: (i, k))
    if support_resident:
        s_spec = pl.BlockSpec((n_pad, f_pad), lambda i, k: (0, 0))   # resident slab
    else:
        s_spec = pl.BlockSpec((tk, f_pad), lambda i, k: (k, 0))      # streamed tiles
    b_spec = pl.BlockSpec((1, f_pad), lambda i, k: (0, 0))
    o_spec = pl.BlockSpec((tm, f_pad), lambda i, k: (i, 0))          # resident acc

    out_p = pl.pallas_call(
        _make_gcn_kernel(support_resident),
        out_shape=jax.ShapeDtypeStruct((n_pad, f_pad), jnp.float32),
        grid_spec=pltpu.PrefetchScalarGridSpec(
            num_scalar_prefetch=0,
            grid=(n_pad // tm, k_steps),                 # reduction axis last
            in_specs=[a_spec, s_spec, b_spec],
            out_specs=o_spec,
        ),
        compiler_params=pltpu.CompilerParams(
            dimension_semantics=("parallel", "arbitrary"),
            vmem_limit_bytes=48 * 1024 * 1024,
        ),
    )(A_p, s_p, b_p)

    return out_p[:N, :f_out]


def reference(x, weight, bias, alpha_table, edge_index, edge_rel, num_nodes):
    """Pure-JAX f32 reference mirroring the PyTorch forward."""
    alp = alpha_table[edge_rel, 0]
    rows, cols = edge_index[0], edge_index[1]
    A = jnp.zeros((num_nodes, num_nodes), jnp.float32).at[rows, cols].add(alp)
    A = A + A.T
    support = x @ weight
    return A @ support + bias


def _make_inputs(key, num_nodes, num_edges, in_features, out_features,
                 num_relations):
    k_w, k_b, k_alpha, k_src, k_dst, k_rel, k_x = jax.random.split(key, 7)

    # reset_parameters(): uniform(-stdv, stdv) with stdv = 1/sqrt(out_features)
    stdv = 1.0 / math.sqrt(out_features)
    weight = jax.random.uniform(k_w, (in_features, out_features),
                                minval=-stdv, maxval=stdv, dtype=jnp.float32)
    bias = jax.random.uniform(k_b, (out_features,),
                              minval=-stdv, maxval=stdv, dtype=jnp.float32)

    # nn.Embedding(num_relations + 1, 1, padding_idx=0): N(0,1), row 0 zeroed.
    alpha_table = jax.random.normal(k_alpha, (num_relations + 1, 1), jnp.float32)
    alpha_table = alpha_table.at[0].set(0.0)

    src = jax.random.randint(k_src, (num_edges,), 0, num_nodes, dtype=jnp.int32)
    dst = jax.random.randint(k_dst, (num_edges,), 0, num_nodes, dtype=jnp.int32)
    edge_index = jnp.stack([src, dst], axis=0)
    edge_rel = jax.random.randint(k_rel, (num_edges,), 0, num_relations + 1,
                                  dtype=jnp.int32)

    x = jax.random.normal(k_x, (num_nodes, in_features), jnp.float32)
    return x, weight, bias, alpha_table, edge_index, edge_rel


if __name__ == "__main__":
    key = jax.random.PRNGKey(0)
    k_small, k_med = jax.random.split(key)

    # ---- small case (matches module-sized hyperparameters) -------------------
    in_features, out_features, num_relations = 16, 32, 4
    num_nodes, num_edges = 32, 64
    args = _make_inputs(k_small, num_nodes, num_edges, in_features,
                        out_features, num_relations)
    x, weight, bias, alpha_table, edge_index, edge_rel = args

    ref = reference(x, weight, bias, alpha_table, edge_index, edge_rel,
                    num_nodes)
    ref = jax.block_until_ready(ref)

    # f32 compute path: tight tolerance vs f32 reference.
    out_f32 = graph_convolution(x, weight, bias, alpha_table, edge_index,
                                edge_rel, num_nodes,
                                compute_dtype=jnp.float32)
    out_f32 = jax.block_until_ready(out_f32)
    assert out_f32.shape == (num_nodes, out_features)
    assert jnp.allclose(out_f32, ref, atol=1e-4, rtol=1e-4)

    # bf16 (bandwidth-optimized) path: relaxed tolerance vs f32 reference.
    out_bf16 = graph_convolution(x, weight, bias, alpha_table, edge_index,
                                 edge_rel, num_nodes,
                                 compute_dtype=jnp.bfloat16)
    out_bf16 = jax.block_until_ready(out_bf16)
    assert out_bf16.shape == (num_nodes, out_features)
    max_err = float(jnp.max(jnp.abs(out_bf16 - ref)))
    assert max_err < 5e-2 * (1.0 + float(jnp.max(jnp.abs(ref)))), max_err

    # ---- medium case: exercises multi-k accumulation (resident-support slice)
    # and the streamed-support fallback path. ----------------------------------
    num_nodes_m, num_edges_m = 300, 2000
    args_m = _make_inputs(k_med, num_nodes_m, num_edges_m, in_features,
                          out_features, num_relations)
    xm, wm, bm, am, eim, erm = args_m
    ref_m = jax.block_until_ready(
        reference(xm, wm, bm, am, eim, erm, num_nodes_m))
    tol_m = 5e-2 * (1.0 + float(jnp.max(jnp.abs(ref_m))))

    # tiny A-tile budget -> several k steps over the resident support slab
    out_m1 = graph_convolution(xm, wm, bm, am, eim, erm, num_nodes_m,
                               compute_dtype=jnp.bfloat16,
                               a_tile_budget_bytes=64 * 1024)
    out_m1 = jax.block_until_ready(out_m1)
    assert out_m1.shape == (num_nodes_m, out_features)
    assert float(jnp.max(jnp.abs(out_m1 - ref_m))) < tol_m

    # streamed (non-resident) support path
    out_m2 = graph_convolution(xm, wm, bm, am, eim, erm, num_nodes_m,
                               compute_dtype=jnp.bfloat16,
                               support_resident=False)
    out_m2 = jax.block_until_ready(out_m2)
    assert out_m2.shape == (num_nodes_m, out_features)
    assert float(jnp.max(jnp.abs(out_m2 - ref_m))) < tol_m

    print("KERNEL_OK")
</pallas_src>

<mosaic_0001>
module attributes {stable_mosaic.version = 11 : i64} {
  func.func @gcn_kernel(%arg0: i32, %arg1: i32, %arg2: memref<128x128xf32, #tpu.memory_space<vmem>>, %arg3: memref<128x128xf32, #tpu.memory_space<vmem>>, %arg4: memref<1x128xf32, #tpu.memory_space<vmem>>, %arg5: memref<128x128xf32, #tpu.memory_space<vmem>>) attributes {dimension_semantics = [#tpu.dimension_semantics<parallel>, #tpu.dimension_semantics<arbitrary>], iteration_bounds = array<i64: 1, 1>, scalar_prefetch = 0 : i64, scratch_operands = 0 : i64, tpu.core_type = #tpu.core_type<tc>, window_params = [{transform_indices = @transform_0, window_bounds = array<i64: 128, 128>}, {pipeline_mode = #tpu.pipeline_mode<synchronous>, transform_indices = @transform_1, window_bounds = array<i64: 128, 128>}, {pipeline_mode = #tpu.pipeline_mode<synchronous>, transform_indices = @transform_2, window_bounds = array<i64: 1, 128>}, {transform_indices = @transform_3, window_bounds = array<i64: 128, 128>}]} {
    %c0_i32 = arith.constant 0 : i32
    %0 = arith.cmpi eq, %arg1, %c0_i32 : i32
    %1 = arith.extui %0 : i1 to i32
    %c0_i32_0 = arith.constant 0 : i32
    %2 = arith.cmpi ne, %1, %c0_i32_0 : i32
    scf.if %2 {
      %cst_9 = arith.constant 0.000000e+00 : f32
      %15 = vector.broadcast %cst_9 : f32 to vector<128x128xf32>
      %c0_10 = arith.constant 0 : index
      %c0_11 = arith.constant 0 : index
      %16 = vector.load %arg5[%c0_10, %c0_11] : memref<128x128xf32, #tpu.memory_space<vmem>>, vector<128x128xf32>
      tpu.vector_store %arg5[%c0_10, %c0_11], %15 {strides = array<i32>} : memref<128x128xf32, #tpu.memory_space<vmem>>, vector<128x128xf32>,
    } else {
    }
    %c128_i32 = arith.constant 128 : i32
    %3 = arith.muli %arg1, %c128_i32 : i32
    %4 = tpu.assume_multiple %3, 128 : i32
    %5 = arith.index_cast %4 : i32 to index
    %c0 = arith.constant 0 : index
    %6 = vector.load %arg3[%5, %c0] : memref<128x128xf32, #tpu.memory_space<vmem>>, vector<128x128xf32>
    %c0_1 = arith.constant 0 : index
    %c0_2 = arith.constant 0 : index
    %7 = vector.load %arg5[%c0_1, %c0_2] : memref<128x128xf32, #tpu.memory_space<vmem>>, vector<128x128xf32>
    %c0_3 = arith.constant 0 : index
    %c0_4 = arith.constant 0 : index
    %8 = vector.load %arg2[%c0_3, %c0_4] : memref<128x128xf32, #tpu.memory_space<vmem>>, vector<128x128xf32>
    %cst = arith.constant dense<0.000000e+00> : vector<128x128xf32>
    %9 = tpu.matmul %8, %6, %cst {dimension_numbers = #tpu.dot_dimension_numbers<[1], [0], [0], [1], [0, 0, 1, 1], [], []>} : vector<128x128xf32>, vector<128x128xf32>, vector<128x128xf32> -> vector<128x128xf32>
    %10 = arith.addf %7, %9 : vector<128x128xf32>
    %c0_5 = arith.constant 0 : index
    %c0_6 = arith.constant 0 : index
    %11 = vector.load %arg5[%c0_5, %c0_6] : memref<128x128xf32, #tpu.memory_space<vmem>>, vector<128x128xf32>
    tpu.vector_store %arg5[%c0_5, %c0_6], %10 {strides = array<i32>} : memref<128x128xf32, #tpu.memory_space<vmem>>, vector<128x128xf32>,
    %c0_i32_7 = arith.constant 0 : i32
    %12 = arith.cmpi eq, %arg1, %c0_i32_7 : i32
    %13 = arith.extui %12 : i1 to i32
    %c0_i32_8 = arith.constant 0 : i32
    %14 = arith.cmpi ne, %13, %c0_i32_8 : i32
    scf.if %14 {
      %c0_9 = arith.constant 0 : index
      %c0_10 = arith.constant 0 : index
      %15 = vector.load %arg5[%c0_9, %c0_10] : memref<128x128xf32, #tpu.memory_space<vmem>>, vector<128x128xf32>
      %c0_11 = arith.constant 0 : index
      %c0_12 = arith.constant 0 : index
      %16 = vector.load %arg4[%c0_11, %c0_12] : memref<1x128xf32, #tpu.memory_space<vmem>>, vector<1x128xf32>
      %17 = vector.broadcast %16 : vector<1x128xf32> to vector<128x128xf32>
      %18 = arith.addf %15, %17 : vector<128x128xf32>
      %c0_13 = arith.constant 0 : index
      %c0_14 = arith.constant 0 : index
      %19 = vector.load %arg5[%c0_13, %c0_14] : memref<128x128xf32, #tpu.memory_space<vmem>>, vector<128x128xf32>
      tpu.vector_store %arg5[%c0_13, %c0_14], %18 {strides = array<i32>} : memref<128x128xf32, #tpu.memory_space<vmem>>, vector<128x128xf32>,
    } else {
    }
    return
  }
  func.func @transform_0(%arg0: i32, %arg1: i32) -> (i32, i32) {
    %c0_i32 = arith.constant 0 : i32
    return %arg0, %arg1 : i32, i32
  }
  func.func @transform_1(%arg0: i32, %arg1: i32) -> (i32, i32) {
    %c0_i32 = arith.constant 0 : i32
    %c0_i32_0 = arith.constant 0 : i32
    %c0_i32_1 = arith.constant 0 : i32
    return %c0_i32, %c0_i32_0 : i32, i32
  }
  func.func @transform_2(%arg0: i32, %arg1: i32) -> (i32, i32) {
    %c0_i32 = arith.constant 0 : i32
    %c0_i32_0 = arith.constant 0 : i32
    %c0_i32_1 = arith.constant 0 : i32
    return %c0_i32, %c0_i32_0 : i32, i32
  }
  func.func @transform_3(%arg0: i32, %arg1: i32) -> (i32, i32) {
    %c0_i32 = arith.constant 0 : i32
    %c0_i32_0 = arith.constant 0 : i32
    return %arg0, %c0_i32 : i32, i32
  }
}

</mosaic_0001>

<bundles_post_ra>
// kernel: tpu_custom_call.1
= control target key start
LH: loop header
LB: loop body
LE: loop exit
PB: predicated region body
PF: predicated region fallthrough
CT: control target
= control target key end

     0   :  { %8 = vsyncpa [#allocation3], 0  ;;  %s605_s0 = inlined_call_operand.hbm [shape: f32[128,128], index: 0, kind: input, shape index: {}]   ;;  %s606_s1 = inlined_call_operand.hbm [shape: f32[128,128], index: 1, kind: input, shape index: {}]   ;;  %s607_s2 = inlined_call_operand.vmem [shape: f32[1,128], index: 2, kind: input, shape index: {}]   ;;  %s608_s3 = inlined_call_operand.hbm [shape: f32[128,128], index: 3, kind: output, shape index: {}]  }
   0x1   :  { %9 = vsyncpa [#allocation6], 0 }
   0x2   :  { %10 = vsyncpa [#allocation4], 0  ;;  %s559_s12 = smov [#allocation2]  }
   0x3   :  { %s16_s13 = sshll.u32 %s559_s12, 4  ;;  %s17_s13 = int_to_ptr.vmem [resolvable:$true] %s16_s13 }
   0x4   :  { %s501_s14 = scalar_lea.vmem %s17_s13, 2048  ;;  %p506_p1 = scmp.lt.s32.totalorder %s17_s13, %s17_s13 }
   0x5   :  { %p502_p0 = scmp.ne.s32.totalorder %s17_s13, %s501_s14  ;;  %p507_p2 = scmp.lt.s32.totalorder %s501_s14, %s501_s14 }
   0x7   :  { %p508_p3 = por %p507_p2, %p506_p1 }
   0x9   :  { %p509_p4 = pnand %p508_p3, %p502_p0 }
   0xb   :  { %512 = shalt.err (!%p509_p4)
}
   0xc   :  { %s560_s15 = smov 128   ;;  %s561_s16 = smov 8  }
   0xd   :  { %22 = dma.hbm_to_vmem [thread:$0]  %s605_s0, 2048, %s17_s13, [#allocation3], %s560_s15, %s560_s15, %s561_s16  }
   0xe   :  { %s562_s19 = smov [#allocation5]  }
   0xf   :  { %s28_s20 = sshll.u32 %s562_s19, 4  ;;  %s29_s20 = int_to_ptr.vmem [resolvable:$true] %s28_s20 }
  0x10   :  { %s521_s21 = scalar_lea.vmem %s29_s20, 2048  ;;  %p526_p6 = scmp.lt.s32.totalorder %s29_s20, %s29_s20 }
  0x11   :  { %p522_p5 = scmp.ne.s32.totalorder %s29_s20, %s521_s21  ;;  %p527_p7 = scmp.lt.s32.totalorder %s521_s21, %s521_s21 }
  0x13   :  { %p528_p8 = por %p527_p7, %p526_p6 }
  0x15   :  { %p529_p9 = pnand %p528_p8, %p522_p5 }
  0x17   :  { %532 = shalt.err (!%p529_p9)
}
  0x18   :  { %34 = dma.hbm_to_vmem [thread:$0]  %s606_s1, 2048, %s29_s20, [#allocation6], %s560_s15, %s560_s15, %s561_s16  }
  0x19   :  { %553 = dma.done.wait [#allocation3], 2048  }
  0x1a   :  { %554 = vsyncadd [#allocation3], 4294965248 }
  0x1b   :  { %555 = dma.done.wait [#allocation6], 2048  }
  0x1c   :  { %556 = vsyncadd [#allocation6], 4294965248  ;;  %v80_v0 = vld [vmem:[#allocation5 + $0x78] sm:$0xff]  ;;  %v79_v1 = vld [vmem:[#allocation5 + $0x70] sm:$0xff] }
  0x1d   :  { %399 = vmatprep.subr.mxu0 %v80_v0  ;;  %455 = vmatprep.subr.mxu1 %v80_v0  ;;  %v78_v2 = vld [vmem:[#allocation5 + $0x68] sm:$0xff]  ;;  %v77_v3 = vld [vmem:[#allocation5 + $0x60] sm:$0xff]  ;;  %v76_v4 = vld [vmem:[#allocation5 + $0x58] sm:$0xff] }
  0x1e   :  { %400 = vmatpush3.msra.mxu0 %v80_v0  ;;  %471 = vmatpush3.msra.mxu1 %v80_v0  ;;  %v75_v5 = vld [vmem:[#allocation5 + $0x50] sm:$0xff]  ;;  %v74_v6 = vld [vmem:[#allocation5 + $0x48] sm:$0xff]  ;;  %v73_v7 = vld [vmem:[#allocation5 + $0x40] sm:$0xff] }
  0x1f   :  { %401 = vmatprep.subr.mxu0 %v79_v1  ;;  %456 = vmatprep.subr.mxu1 %v79_v1  ;;  %v72_v8 = vld [vmem:[#allocation5 + $0x38] sm:$0xff]  ;;  %v71_v9 = vld [vmem:[#allocation5 + $0x30] sm:$0xff]  ;;  %v70_v10 = vld [vmem:[#allocation5 + $0x28] sm:$0xff] }
  0x20   :  { %402 = vmatpush3.msra.mxu0 %v79_v1  ;;  %472 = vmatpush3.msra.mxu1 %v79_v1  ;;  %v69_v11 = vld [vmem:[#allocation5 + $0x20] sm:$0xff]  ;;  %v68_v12 = vld [vmem:[#allocation5 + $0x18] sm:$0xff]  ;;  %v67_v13 = vld [vmem:[#allocation5 + $0x10] sm:$0xff] }
  0x21   :  { %403 = vmatprep.subr.mxu0 %v78_v2  ;;  %457 = vmatprep.subr.mxu1 %v78_v2  ;;  %v66_v14 = vld [vmem:[#allocation5 + $0x8] sm:$0xff]  ;;  %v65_v15 = vld [vmem:[#allocation5] sm:$0xff]  ;;  %v99_v20 = vld [vmem:[#allocation2 + $0x10] sm:$0xff] }
  0x22   :  { %404 = vmatpush3.msra.mxu0 %v78_v2  ;;  %473 = vmatpush3.msra.mxu1 %v78_v2  ;;  %v97_v16 = vld [vmem:[#allocation2] sm:$0xff]  ;;  %v98_v18 = vld [vmem:[#allocation2 + $0x8] sm:$0xff]  ;;  %v107_v21 = vld [vmem:[#allocation2 + $0x50] sm:$0xff] }
  0x23   :  { %405 = vmatprep.subr.mxu0 %v77_v3  ;;  %458 = vmatprep.subr.mxu1 %v77_v3  ;;  %v105_v17 = vld [vmem:[#allocation2 + $0x40] sm:$0xff]  ;;  %v106_v19 = vld [vmem:[#allocation2 + $0x48] sm:$0xff]  ;;  %v100_v22 = vld [vmem:[#allocation2 + $0x18] sm:$0xff] }
  0x24   :  { %406 = vmatpush3.msra.mxu0 %v77_v3  ;;  %474 = vmatpush3.msra.mxu1 %v77_v3  ;;  %v108_v23 = vld [vmem:[#allocation2 + $0x58] sm:$0xff]  ;;  %v101_v24 = vld [vmem:[#allocation2 + $0x20] sm:$0xff]  ;;  %v102_v26 = vld [vmem:[#allocation2 + $0x28] sm:$0xff] }
  0x25   :  { %407 = vmatprep.subr.mxu0 %v76_v4  ;;  %459 = vmatprep.subr.mxu1 %v76_v4  ;;  %v109_v25 = vld [vmem:[#allocation2 + $0x60] sm:$0xff]  ;;  %v110_v27 = vld [vmem:[#allocation2 + $0x68] sm:$0xff]  ;;  %v103_v28 = vld [vmem:[#allocation2 + $0x30] sm:$0xff] }
  0x26   :  { %408 = vmatpush3.msra.mxu0 %v76_v4  ;;  %475 = vmatpush3.msra.mxu1 %v76_v4  ;;  %v111_v29 = vld [vmem:[#allocation2 + $0x70] sm:$0xff]  ;;  %v104_v30 = vld [vmem:[#allocation2 + $0x38] sm:$0xff]  ;;  %v366_v33 = vld [vmem:[%s607_s2] ss:$0 sm:$0xff]  ;;  %s563_s2 = smov [#allocation7]  }
  0x27   :  { %409 = vmatprep.subr.mxu0 %v75_v5  ;;  %460 = vmatprep.subr.mxu1 %v75_v5  ;;  %v112_v31 = vld [vmem:[#allocation2 + $0x78] sm:$0xff]  ;;  %s353_s24 = sshll.u32 %s563_s2, 4  ;;  %s354_s24 = int_to_ptr.vmem [resolvable:$true] %s353_s24 }
  0x28   :  { %410 = vmatpush3.msra.mxu0 %v75_v5  ;;  %476 = vmatpush3.msra.mxu1 %v75_v5  ;;  %s533_s25 = scalar_lea.vmem %s354_s24, 2048  ;;  %p538_p11 = scmp.lt.s32.totalorder %s354_s24, %s354_s24 }
  0x29   :  { %411 = vmatprep.subr.mxu0 %v74_v6  ;;  %461 = vmatprep.subr.mxu1 %v74_v6  ;;  %p534_p10 = scmp.ne.s32.totalorder %s354_s24, %s533_s25  ;;  %p539_p12 = scmp.lt.s32.totalorder %s533_s25, %s533_s25 }
  0x2a   :  { %412 = vmatpush3.msra.mxu0 %v74_v6  ;;  %477 = vmatpush3.msra.mxu1 %v74_v6 }
  0x2b   :  { %413 = vmatprep.subr.mxu0 %v73_v7  ;;  %462 = vmatprep.subr.mxu1 %v73_v7  ;;  %p540_p13 = por %p539_p12, %p538_p11 }
  0x2c   :  { %414 = vmatpush3.msra.mxu0 %v73_v7  ;;  %478 = vmatpush3.msra.mxu1 %v73_v7 }
  0x2d   :  { %415 = vmatprep.subr.mxu0 %v72_v8  ;;  %463 = vmatprep.subr.mxu1 %v72_v8  ;;  %p541_p0 = pnand %p540_p13, %p534_p10 }
  0x2e   :  { %416 = vmatpush3.msra.mxu0 %v72_v8  ;;  %479 = vmatpush3.msra.mxu1 %v72_v8 }
  0x2f   :  { %417 = vmatprep.subr.mxu0 %v71_v9  ;;  %464 = vmatprep.subr.mxu1 %v71_v9 }
  0x30   :  { %418 = vmatpush3.msra.mxu0 %v71_v9  ;;  %480 = vmatpush3.msra.mxu1 %v71_v9 }
  0x31   :  { %419 = vmatprep.subr.mxu0 %v70_v10  ;;  %465 = vmatprep.subr.mxu1 %v70_v10 }
  0x32   :  { %420 = vmatpush3.msra.mxu0 %v70_v10  ;;  %481 = vmatpush3.msra.mxu1 %v70_v10 }
  0x33   :  { %421 = vmatprep.subr.mxu0 %v69_v11  ;;  %466 = vmatprep.subr.mxu1 %v69_v11 }
  0x34   :  { %422 = vmatpush3.msra.mxu0 %v69_v11  ;;  %482 = vmatpush3.msra.mxu1 %v69_v11 }
  0x35   :  { %423 = vmatprep.subr.mxu0 %v68_v12  ;;  %467 = vmatprep.subr.mxu1 %v68_v12 }
  0x36   :  { %424 = vmatpush3.msra.mxu0 %v68_v12  ;;  %483 = vmatpush3.msra.mxu1 %v68_v12 }
  0x37   :  { %425 = vmatprep.subr.mxu0 %v67_v13  ;;  %468 = vmatprep.subr.mxu1 %v67_v13 }
  0x38   :  { %426 = vmatpush3.msra.mxu0 %v67_v13  ;;  %484 = vmatpush3.msra.mxu1 %v67_v13 }
  0x39   :  { %427 = vmatprep.subr.mxu0 %v66_v14  ;;  %469 = vmatprep.subr.mxu1 %v66_v14 }
  0x3a   :  { %428 = vmatpush3.msra.mxu0 %v66_v14  ;;  %485 = vmatpush3.msra.mxu1 %v66_v14 }
  0x3b   :  { %429 = vmatprep.subr.mxu0 %v65_v15  ;;  %470 = vmatprep.subr.mxu1 %v65_v15 }
  0x3c   :  { %430 = vmatpush3.msra.mxu0 %v65_v15  ;;  %486 = vmatpush3.msra.mxu1 %v65_v15 }
  0x3d   :  { %431 = vmatprep.mubr.f32.mxu0 %v97_v16  ;;  %443 = vmatprep.mubr.f32.mxu1 %v105_v17 }
  0x3e   :  { %432 = vmatmul.mubr.f32.vlgmr.msra.gmra.mxu0 %v98_v18  ;;  %444 = vmatmul.mubr.f32.vlgmr.msra.gmra.mxu1 %v106_v19 }
  0x3f   :  { %434 = vmatprep.mubr.f32.mxu0 %v99_v20  ;;  %446 = vmatprep.mubr.f32.mxu1 %v107_v21 }
  0x42   :  { %435 = vmatmul.mubr.f32.gmra.mxu0 %v100_v22  ;;  %447 = vmatmul.mubr.f32.gmra.mxu1 %v108_v23 }
  0x43   :  { %437 = vmatprep.mubr.f32.mxu0 %v101_v24  ;;  %449 = vmatprep.mubr.f32.mxu1 %v109_v25 }
  0x46   :  { %438 = vmatmul.mubr.f32.gmra.mxu0 %v102_v26  ;;  %450 = vmatmul.mubr.f32.gmra.mxu1 %v110_v27 }
  0x47   :  { %440 = vmatprep.mubr.f32.mxu0 %v103_v28  ;;  %452 = vmatprep.mubr.f32.mxu1 %v111_v29 }
  0x4a   :  { %441 = vmatmul.mubr.f32.gmra.mxu0 %v104_v30  ;;  %453 = vmatmul.mubr.f32.gmra.mxu1 %v112_v31 }
  0xfe   :  { %v433_v32 = vpop.f32.mrf.mxu0  ;;  %v445_v34 = vpop.f32.mrf.mxu1 }
  0xff   :  { %v317_v37 = vadd.f32 %v433_v32, %v366_v33  ;;  %v325_v38 = vadd.f32 %v445_v34, %v366_v33 }
 0x100   :  { %v179_v35 = vpop.f32.mrf.mxu0  ;;  %v219_v36 = vpop.f32.mrf.mxu1 }
 0x101   :  { %333 = vst [vmem:[#allocation7 + $0x8] sm:$0xff] %v317_v37  ;;  %341 = vst [vmem:[#allocation7 + $0x48] sm:$0xff] %v325_v38  ;;  %v316_v41 = vadd.f32 %v366_v33, %v179_v35  ;;  %v324_v42 = vadd.f32 %v366_v33, %v219_v36 }
 0x102   :  { %v436_v39 = vpop.f32.mrf.mxu0  ;;  %v448_v40 = vpop.f32.mrf.mxu1 }
 0x103   :  { %332 = vst [vmem:[#allocation7] sm:$0xff] %v316_v41  ;;  %340 = vst [vmem:[#allocation7 + $0x40] sm:$0xff] %v324_v42  ;;  %v319_v45 = vadd.f32 %v436_v39, %v366_v33  ;;  %v327_v46 = vadd.f32 %v448_v40, %v366_v33 }
 0x104   :  { %v189_v43 = vpop.f32.mrf.mxu0  ;;  %v229_v44 = vpop.f32.mrf.mxu1 }
 0x105   :  { %335 = vst [vmem:[#allocation7 + $0x18] sm:$0xff] %v319_v45  ;;  %343 = vst [vmem:[#allocation7 + $0x58] sm:$0xff] %v327_v46  ;;  %v318_v49 = vadd.f32 %v366_v33, %v189_v43  ;;  %v326_v50 = vadd.f32 %v366_v33, %v229_v44 }
 0x106   :  { %v439_v47 = vpop.f32.mrf.mxu0  ;;  %v451_v48 = vpop.f32.mrf.mxu1 }
 0x107   :  { %334 = vst [vmem:[#allocation7 + $0x10] sm:$0xff] %v318_v49  ;;  %342 = vst [vmem:[#allocation7 + $0x50] sm:$0xff] %v326_v50  ;;  %v321_v53 = vadd.f32 %v439_v47, %v366_v33  ;;  %v329_v54 = vadd.f32 %v451_v48, %v366_v33 }
 0x108   :  { %v199_v51 = vpop.f32.mrf.mxu0  ;;  %v239_v52 = vpop.f32.mrf.mxu1 }
 0x109   :  { %337 = vst [vmem:[#allocation7 + $0x28] sm:$0xff] %v321_v53  ;;  %345 = vst [vmem:[#allocation7 + $0x68] sm:$0xff] %v329_v54  ;;  %v320_v57 = vadd.f32 %v366_v33, %v199_v51  ;;  %v328_v58 = vadd.f32 %v366_v33, %v239_v52 }
 0x10a   :  { %v442_v55 = vpop.f32.mrf.mxu0  ;;  %v454_v56 = vpop.f32.mrf.mxu1 }
 0x10b   :  { %336 = vst [vmem:[#allocation7 + $0x20] sm:$0xff] %v320_v57  ;;  %344 = vst [vmem:[#allocation7 + $0x60] sm:$0xff] %v328_v58  ;;  %v323_v61 = vadd.f32 %v442_v55, %v366_v33  ;;  %v331_v62 = vadd.f32 %v454_v56, %v366_v33 }
 0x10c   :  { %v209_v59 = vpop.f32.mrf.mxu0  ;;  %v249_v60 = vpop.f32.mrf.mxu1 }
 0x10d   :  { %339 = vst [vmem:[#allocation7 + $0x38] sm:$0xff] %v323_v61  ;;  %347 = vst [vmem:[#allocation7 + $0x78] sm:$0xff] %v331_v62  ;;  %v322_v63 = vadd.f32 %v366_v33, %v209_v59  ;;  %v330_v0 = vadd.f32 %v366_v33, %v249_v60 }
 0x10f   :  { %338 = vst [vmem:[#allocation7 + $0x30] sm:$0xff] %v322_v63  ;;  %346 = vst [vmem:[#allocation7 + $0x70] sm:$0xff] %v330_v0 }
 0x110   :  { %544 = shalt.err (!%p541_p0)
}
 0x111   :  { %359 = dma.vmem_to_hbm [thread:$0]  %s354_s24, 2048, %s608_s3, [#allocation4], %s560_s15, %s560_s15, %s561_s16  }
 0x112   :  { %557 = dma.done.wait [#allocation4], 2048  }
 0x113   :  { %558 = vsyncadd [#allocation4], 4294965248 }
 0x114   :  { %363 = vsyncpa [#allocation3], 1 }
 0x115   :  { %364 = vsyncpa [#allocation6], 1 }
 0x116   :  { %365 = vsyncpa [#allocation4], 1 }

</bundles_post_ra>
